<compile_context>
chip_gen: v6e
topology: v6e:2x2x1
jax: 0.10.0
libtpu: 0.0.40
codegen_flags: <defaults>
</compile_context>

<pallas_src>
import functools

import numpy as np
import jax
import jax.numpy as jnp
from jax.experimental import pallas as pl
from jax.experimental.pallas import tpu as pltpu

N_FFT = 512
HOP = 256
N_FREQ = N_FFT // 2 + 1          # 257 one-sided bins
N_KC = 256                       # matmul frequency columns (k = 0..255)
MAX_TM = 1024                    # frames (matmul rows) per grid tile


def _round_up(x, m):
    return (x + m - 1) // m * m


def stft_mse_kernel(r_ref, t_ref, rhs_ref, out_ref, *, tm):
    """One frame tile.

    r_ref, t_ref : (tm, N_FFT) bf16 recon / target frames (unwindowed).
    rhs_ref      : (N_FFT, 2*N_KC) bf16 window-folded real-DFT basis.
                   Columns [0:256)   = win * cos(2*pi*n*k/512), k = 0..255
                   Column  256       = win * (-1)^n   (Nyquist cos, reusing
                                       the identically-zero sin column k=0)
                   Columns (256:512) = -win * sin(2*pi*n*k/512), k = 1..255
    out_ref      : (8, N_KC) f32 per-tile partial sums of squared magnitude
                   differences (all 257 bins folded into 256 lanes).
    """
    rhs = rhs_ref[...]
    rr = jnp.dot(r_ref[...], rhs, preferred_element_type=jnp.float32)
    tt = jnp.dot(t_ref[...], rhs, preferred_element_type=jnp.float32)

    is0 = jax.lax.broadcasted_iota(jnp.int32, (tm, N_KC), 1) == 0

    def mags(res):
        re = res[:, :N_KC]
        imx = res[:, N_KC:]
        # Column 0 of imx holds the Nyquist real part, not im(k=0) (which is
        # identically zero), so mask it out of the main power spectrum.
        im = jnp.where(is0, 0.0, imx)
        mag = jnp.sqrt(re * re + im * im)              # bins k = 0..255
        nyq = jnp.where(is0, jnp.abs(imx), 0.0)        # Nyquist |.| in col 0
        return mag, nyq

    mr, nr = mags(rr)
    mt, nt = mags(tt)
    # Squared magnitude difference for all 257 bins, folded into 256 lanes
    # (the Nyquist term lives only in column 0 of the nyq arrays).
    d2 = (mr - mt) ** 2 + (nr - nt) ** 2
    # Fold tm rows down to 8 sublanes with pure VPU adds; the final (cheap)
    # reduction over (n_tiles*8, N_KC) happens in the JAX wrapper.
    out_ref[...] = jnp.sum(d2.reshape(tm // 8, 8, N_KC), axis=0)


def _dft_rhs():
    """Merged window-folded one-sided real-DFT basis, (N_FFT, 2*N_KC) bf16."""
    n = np.arange(N_FFT, dtype=np.float64)
    k = np.arange(N_KC, dtype=np.float64)
    win = 0.5 - 0.5 * np.cos(2.0 * np.pi * n / N_FFT)          # Hann (periodic)
    ang = 2.0 * np.pi * n[:, None] * k[None, :] / N_FFT
    cos_m = win[:, None] * np.cos(ang)                         # (512, 256)
    sin_m = win[:, None] * (-np.sin(ang))                      # (512, 256)
    # sin column for k=0 is identically zero; reuse it for the Nyquist (k=256)
    # cos column win * (-1)^n (its own sin column is also identically zero).
    sin_m[:, 0] = win * np.cos(np.pi * n)
    rhs = np.concatenate([cos_m, sin_m], axis=1).astype(np.float32)
    return jnp.asarray(rhs, dtype=jnp.bfloat16)


def _frame_signal(x):
    """x: (B, T) f32 -> frames (B*n_frames, N_FFT) f32 (unwindowed), n_frames.

    Centered reflect padding; frames assembled from two HOP-block slices
    (no advanced-index gather).
    """
    b, t = x.shape
    pad = N_FFT // 2
    xp = jnp.pad(x, ((0, 0), (pad, pad)), mode="reflect")
    tp = t + 2 * pad
    n_frames = 1 + (tp - N_FFT) // HOP
    needed = (n_frames + 1) * HOP              # samples covering all frames
    blocks = xp[:, :needed].reshape(b, n_frames + 1, HOP)
    frames = jnp.concatenate([blocks[:, :-1], blocks[:, 1:]], axis=-1)
    return frames.reshape(b * n_frames, N_FFT), n_frames


def stft_loss(recon, target):
    """MSE between magnitude STFTs of recon and target. recon/target: (B, T)."""
    recon = recon.astype(jnp.float32)
    target = target.astype(jnp.float32)
    b = recon.shape[0]

    rf, n_frames = _frame_signal(recon)
    tf, _ = _frame_signal(target)
    f = rf.shape[0]

    # Tile choice: as large as possible (amortize per-step overhead), but at
    # least two tiles when f allows it so both v7x TensorCores get work.
    f8 = _round_up(f, 8)
    tm = min(MAX_TM, max(8, _round_up((f8 + 1) // 2, 8)))
    n_tiles = pl.cdiv(f, tm)
    f_pad = n_tiles * tm
    if f_pad != f:
        # Zero frames give zero magnitude on both sides -> zero contribution.
        rf = jnp.pad(rf, ((0, f_pad - f), (0, 0)))
        tf = jnp.pad(tf, ((0, f_pad - f), (0, 0)))

    rf = rf.astype(jnp.bfloat16)
    tf = tf.astype(jnp.bfloat16)
    rhs = _dft_rhs()

    flops = 2 * 2 * f_pad * N_FFT * (2 * N_KC)          # one dot per signal
    transcendentals = 2 * f_pad * N_KC                   # sqrts
    bytes_accessed = (2 * f_pad * N_FFT * 2              # rf + tf (bf16)
                      + N_FFT * 2 * N_KC * 2             # basis (bf16, once)
                      + n_tiles * 8 * N_KC * 4)          # partial sums (f32)

    part = pl.pallas_call(
        functools.partial(stft_mse_kernel, tm=tm),
        out_shape=jax.ShapeDtypeStruct((n_tiles * 8, N_KC), jnp.float32),
        grid=(n_tiles,),
        in_specs=[
            pl.BlockSpec((tm, N_FFT), lambda m: (m, 0)),
            pl.BlockSpec((tm, N_FFT), lambda m: (m, 0)),
            pl.BlockSpec((N_FFT, 2 * N_KC), lambda m: (0, 0)),
        ],
        out_specs=pl.BlockSpec((8, N_KC), lambda m: (m, 0)),
        compiler_params=pltpu.CompilerParams(
            dimension_semantics=("parallel",),
            vmem_limit_bytes=48 * 1024 * 1024),
        cost_estimate=pl.CostEstimate(
            flops=flops,
            transcendentals=transcendentals,
            bytes_accessed=bytes_accessed),
    )(rf, tf, rhs)

    # Padded rows contribute exactly 0; all 257 true bins are represented.
    n_elems = b * N_FREQ * n_frames
    return jnp.sum(part) / jnp.float32(n_elems)


def _reference_stft_loss(recon, target):
    """Pure-JAX f32 reference (explicit Hann window + rfft magnitude MSE)."""
    n = np.arange(N_FFT, dtype=np.float64)
    win = jnp.asarray(
        (0.5 - 0.5 * np.cos(2.0 * np.pi * n / N_FFT)).astype(np.float32))

    def mag(x):
        frames, _ = _frame_signal(x.astype(jnp.float32))
        return jnp.abs(jnp.fft.rfft(frames * win[None, :], n=N_FFT, axis=-1))

    r = mag(recon)
    t = mag(target)
    return jnp.mean((r - t) ** 2)


if __name__ == "__main__":
    key = jax.random.PRNGKey(0)
    k1, k2 = jax.random.split(key)
    B, T = 2, 1024  # small waveform shapes consistent with stft(x, 512, 256)
    recon = jax.random.normal(k1, (B, T), dtype=jnp.float32)
    target = jax.random.normal(k2, (B, T), dtype=jnp.float32)

    loss = jax.block_until_ready(stft_loss(recon, target))
    ref = jax.block_until_ready(_reference_stft_loss(recon, target))
    # Tolerance relaxed deliberately: matmul operands are bf16 on the MXU
    # (f32 accumulation); observed loss error is well inside ~1%.
    np.testing.assert_allclose(np.asarray(loss), np.asarray(ref),
                               rtol=2e-2, atol=1e-2)
    print("KERNEL_OK")
</pallas_src>

<mosaic_0001>
module attributes {stable_mosaic.version = 11 : i64} {
  func.func @stft_mse_kernel(%arg0: i32, %arg1: memref<8x512xbf16, #tpu.memory_space<vmem>>, %arg2: memref<8x512xbf16, #tpu.memory_space<vmem>>, %arg3: memref<512x512xbf16, #tpu.memory_space<vmem>>, %arg4: memref<8x256xf32, #tpu.memory_space<vmem>>) attributes {dimension_semantics = [#tpu.dimension_semantics<parallel>], iteration_bounds = array<i64: 2>, scalar_prefetch = 0 : i64, scratch_operands = 0 : i64, tpu.core_type = #tpu.core_type<tc>, window_params = [{transform_indices = @transform_0, window_bounds = array<i64: 8, 512>}, {transform_indices = @transform_1, window_bounds = array<i64: 8, 512>}, {pipeline_mode = #tpu.pipeline_mode<synchronous>, transform_indices = @transform_2, window_bounds = array<i64: 512, 512>}, {transform_indices = @transform_3, window_bounds = array<i64: 8, 256>}]} {
    %c0 = arith.constant 0 : index
    %c0_0 = arith.constant 0 : index
    %0 = vector.load %arg3[%c0, %c0_0] : memref<512x512xbf16, #tpu.memory_space<vmem>>, vector<512x512xbf16>
    %c0_1 = arith.constant 0 : index
    %c0_2 = arith.constant 0 : index
    %1 = vector.load %arg1[%c0_1, %c0_2] : memref<8x512xbf16, #tpu.memory_space<vmem>>, vector<8x512xbf16>
    %cst = arith.constant dense<0.000000e+00> : vector<8x512xf32>
    %2 = tpu.matmul %1, %0, %cst {dimension_numbers = #tpu.dot_dimension_numbers<[1], [0], [0], [1], [0, 0, 1, 1], [], []>} : vector<8x512xbf16>, vector<512x512xbf16>, vector<8x512xf32> -> vector<8x512xf32>
    %c0_3 = arith.constant 0 : index
    %c0_4 = arith.constant 0 : index
    %3 = vector.load %arg2[%c0_3, %c0_4] : memref<8x512xbf16, #tpu.memory_space<vmem>>, vector<8x512xbf16>
    %cst_5 = arith.constant dense<0.000000e+00> : vector<8x512xf32>
    %4 = tpu.matmul %3, %0, %cst_5 {dimension_numbers = #tpu.dot_dimension_numbers<[1], [0], [0], [1], [0, 0, 1, 1], [], []>} : vector<8x512xbf16>, vector<512x512xbf16>, vector<8x512xf32> -> vector<8x512xf32>
    %5 = tpu.iota {dimensions = array<i32: 1>} : vector<8x256xi32>
    %c0_i32 = arith.constant 0 : i32
    %6 = vector.broadcast %c0_i32 : i32 to vector<8x256xi32>
    %7 = arith.cmpi eq, %5, %6 : vector<8x256xi32>
    %8 = vector.extract_strided_slice %2 {offsets = [0, 0], sizes = [8, 256], strides = [1, 1]} : vector<8x512xf32> to vector<8x256xf32>
    %9 = vector.extract_strided_slice %2 {offsets = [0, 256], sizes = [8, 256], strides = [1, 1]} : vector<8x512xf32> to vector<8x256xf32>
    %cst_6 = arith.constant 0.000000e+00 : f32
    %10 = vector.broadcast %cst_6 : f32 to vector<8x256xf32>
    %11 = arith.select %7, %10, %9 : vector<8x256xi1>, vector<8x256xf32>
    %12 = arith.mulf %8, %8 : vector<8x256xf32>
    %13 = arith.mulf %11, %11 : vector<8x256xf32>
    %14 = arith.addf %12, %13 : vector<8x256xf32>
    %15 = math.sqrt %14 : vector<8x256xf32>
    %16 = math.absf %9 : vector<8x256xf32>
    %cst_7 = arith.constant 0.000000e+00 : f32
    %17 = vector.broadcast %cst_7 : f32 to vector<8x256xf32>
    %18 = arith.select %7, %16, %17 : vector<8x256xi1>, vector<8x256xf32>
    %19 = vector.extract_strided_slice %4 {offsets = [0, 0], sizes = [8, 256], strides = [1, 1]} : vector<8x512xf32> to vector<8x256xf32>
    %20 = vector.extract_strided_slice %4 {offsets = [0, 256], sizes = [8, 256], strides = [1, 1]} : vector<8x512xf32> to vector<8x256xf32>
    %cst_8 = arith.constant 0.000000e+00 : f32
    %21 = vector.broadcast %cst_8 : f32 to vector<8x256xf32>
    %22 = arith.select %7, %21, %20 : vector<8x256xi1>, vector<8x256xf32>
    %23 = arith.mulf %19, %19 : vector<8x256xf32>
    %24 = arith.mulf %22, %22 : vector<8x256xf32>
    %25 = arith.addf %23, %24 : vector<8x256xf32>
    %26 = math.sqrt %25 : vector<8x256xf32>
    %27 = math.absf %20 : vector<8x256xf32>
    %cst_9 = arith.constant 0.000000e+00 : f32
    %28 = vector.broadcast %cst_9 : f32 to vector<8x256xf32>
    %29 = arith.select %7, %27, %28 : vector<8x256xi1>, vector<8x256xf32>
    %30 = arith.subf %15, %26 : vector<8x256xf32>
    %31 = arith.mulf %30, %30 : vector<8x256xf32>
    %32 = arith.subf %18, %29 : vector<8x256xf32>
    %33 = arith.mulf %32, %32 : vector<8x256xf32>
    %34 = arith.addf %31, %33 : vector<8x256xf32>
    %35 = vector.shape_cast %34 : vector<8x256xf32> to vector<1x8x256xf32>
    %cst_10 = arith.constant dense<0.000000e+00> : vector<8x256xf32>
    %36 = vector.multi_reduction <add>, %35, %cst_10 [0] : vector<1x8x256xf32> to vector<8x256xf32>
    %c0_11 = arith.constant 0 : index
    %c0_12 = arith.constant 0 : index
    %37 = vector.load %arg4[%c0_11, %c0_12] : memref<8x256xf32, #tpu.memory_space<vmem>>, vector<8x256xf32>
    tpu.vector_store %arg4[%c0_11, %c0_12], %36 {strides = array<i32>} : memref<8x256xf32, #tpu.memory_space<vmem>>, vector<8x256xf32>,
    return
  }
  func.func @transform_0(%arg0: i32) -> (i32, i32) {
    %c0_i32 = arith.constant 0 : i32
    %c0_i32_0 = arith.constant 0 : i32
    return %arg0, %c0_i32 : i32, i32
  }
  func.func @transform_1(%arg0: i32) -> (i32, i32) {
    %c0_i32 = arith.constant 0 : i32
    %c0_i32_0 = arith.constant 0 : i32
    return %arg0, %c0_i32 : i32, i32
  }
  func.func @transform_2(%arg0: i32) -> (i32, i32) {
    %c0_i32 = arith.constant 0 : i32
    %c0_i32_0 = arith.constant 0 : i32
    %c0_i32_1 = arith.constant 0 : i32
    return %c0_i32, %c0_i32_0 : i32, i32
  }
  func.func @transform_3(%arg0: i32) -> (i32, i32) {
    %c0_i32 = arith.constant 0 : i32
    %c0_i32_0 = arith.constant 0 : i32
    return %arg0, %c0_i32 : i32, i32
  }
}

</mosaic_0001>

<bundles_post_ra>
// kernel: tpu_custom_call.1
= control target key start
LH: loop header
LB: loop body
LE: loop exit
PB: predicated region body
PF: predicated region fallthrough
CT: control target
= control target key end

     0   :  { %8 = vsyncpa [#allocation3], 0  ;;  %s2956_s0 = inlined_call_operand.hbm [shape: bf16[16,512], index: 0, kind: input, shape index: {}]   ;;  %s2957_s1 = inlined_call_operand.hbm [shape: bf16[16,512], index: 1, kind: input, shape index: {}]   ;;  %s2958_s2 = inlined_call_operand.hbm [shape: bf16[512,512], index: 2, kind: input, shape index: {}]   ;;  %s2959_s3 = inlined_call_operand.hbm [shape: f32[16,256], index: 3, kind: output, shape index: {}]  }
   0x1   :  { %10 = vsyncpa [#allocation3 + $0x1], 0 }
   0x2   :  { %11 = vsyncpa [#allocation6], 0 }
   0x3   :  { %13 = vsyncpa [#allocation6 + $0x1], 0 }
   0x4   :  { %14 = vsyncpa [#allocation4], 0 }
   0x5   :  { %16 = vsyncpa [#allocation4 + $0x1], 0  ;;  %s2168_s12 = smov 0   ;;  %s2170_s13 = smov 0  }
   0x6   :  { %s2172_s14 = smov 0   ;;  %s2174_s15 = smov 0  }
   0x7 LB: > { %s2189_s16 = sadd.s32 4294967295, %s2140_s15   ;;  %s1555_s17 = sadd.s32 4294967294, %s2140_s15   ;;  %s2140_s15 = sphi %s2174_s15, %s3191_s15   ;;  %s2136_s14 = sphi %s2172_s14, %s3190_s14   ;;  %s2132_s13 = sphi %s2170_s13, %s3189_s13   ;;  %s2128_s12 = sphi %s2168_s12, %s3188_s12  }
   0x8   : > { %p42_p0 = scmp.ne.s32.totalorder %s2132_s13, %s2128_s12  ;;  %p2960_p1 = scmp.eq.s32.totalorder %s2189_s16, 0 }
   0x9   : > { %p119_p3 = scmp.eq.s32.totalorder %s1555_s17, 1  ;;  %p1556_p5 = scmp.ge.s32.totalorder %s2140_s15, 1 }
   0xa   : > { %p2198_p4 = por %p2960_p1, %p42_p0  ;;  %p126_p7 = scmp.lt.s32.totalorder %s2140_s15, 3 }
   0xb   : > { %p2203_p6 = por %p119_p3, %p42_p0  ;;  %s2142_s21 = smov [#allocation7]  }
   0xc   : > { %s3034_s18 = scalar_select %p2198_p4, 1, 0 }
   0xd   : > { %s3035_s19 = scalar_select %p2203_p6, 1, 0 }
   0xe   : > { %p2208_p8 = pnand %p1556_p5, %p126_p7  ;;  %s138_s22 = sshll.u32 %s2142_s21, 4  ;;  %s139_s22 = int_to_ptr.vmem [resolvable:$true] %s138_s22 }
   0xf   : > { %s2222_s24 = sadd.s32 1, %s2140_s15   ;;  %s29_s25 = sadd.s32 1, %s2136_s14 }
  0x10   : > { %s3036_s20 = scalar_select %p2208_p8, 1, 0 }
  0x11   : > { %p1724_p9 = pneg %p2208_p8  ;;  %s26_s26 = ssub.s32 %s2140_s15, %s2222_s24 }
  0x12   : > { %s1997_s27 = scalar_lea.vmem %s139_s22, 16384  ;;  %p2005_p5 = scmp.lt.s32.totalorder %s139_s22, %s139_s22 }
  0x13   : > { %p2217_p11 = pnand %p1724_p9, %p2960_p1  ;;  %p1998_p13 = scmp.ne.s32.totalorder %s139_s22, %s1997_s27 }
  0x14   : > { %p2006_p7 = scmp.lt.s32.totalorder %s1997_s27, %s1997_s27 }
  0x15   : > { %p1988_p12 = pneg %p2217_p11 }
  0x16   : > { %p2007_p10 = por %p2006_p7, %p2005_p5 }
  0x17   : > { %p2000_p0 = pnand %p1998_p13, %p1988_p12 }
  0x19   : > { %p2001_p3 = pneg %p2000_p0 }
  0x1b   : > { %p2008_p2 = pnand %p2007_p10, %p2001_p3 }
  0x1d   : > { %2011 = shalt.err (!%p2008_p2)
}
  0x1e   : > { %s2143_s28 = smov 256   ;;  %s2144_s29 = smov 16  }
  0x1f   : > { %1727 = dma.hbm_to_vmem [thread:$0]  (!%p2217_p11), %s2958_s2, 16384, %s139_s22, [#allocation6], %s2143_s28, %s2143_s28, %s2144_s29  }
  0x20   : > { %p27_p9 = scmp.eq.s32.totalorder %s26_s26, 0  ;;  %p36_p12 = scmp.ne.s32.totalorder %s2136_s14, %s2132_s13 }
  0x21   : > { %p37_p10 = scmp.eq.s32.totalorder %s2140_s15, 0  ;;  %p1740_p2 = scmp.lt.s32.totalorder %s2140_s15, 2 }
  0x22   : > { %s2239_s5 = scalar_select %p27_p9, %s2136_s14, %s29_s25  }
  0x23   : > { %p38_p13 = por %p37_p10, %p36_p12  ;;  %p3038_p0 = scmp.eq.s32.totalorder %s2189_s16, 1 }
  0x24   : > { %s152_s7 = sand.u32 1, %s2136_s14   ;;  %s1711_s8 = sshll.u32 %s2140_s15, 8 }
  0x25   : > { %p2243_p3 = por %p3038_p0, %p36_p12  ;;  %s2249_s9 = sshll.u32 %s152_s7, 4 }
  0x26   : > { %s2254_s17 = scalar_lea.hbm %s2956_s0, %s1711_s8  ;;  %s156_s21 = scalar_lea.vmem [#allocation2], %s2249_s9 }
  0x27   : > { %s3039_s6 = scalar_select %p2243_p3, 1, 0 }
  0x28   : > { %s164_s22 = sshll.u32 %s156_s21, 4  ;;  %p2257_p11 = pnand %p1740_p2, %p38_p13  ;;  %s165_s22 = int_to_ptr.vmem [resolvable:$true] %s164_s22 }
  0x29   : > { %s2264_s27 = scalar_lea.hbm %s2957_s1, %s1711_s8  ;;  %s153_s28 = scalar_lea.sflag [#allocation3], %s152_s7 }
  0x2a   : > { %s2012_s29 = scalar_lea.hbm %s2254_s17, 256  ;;  %p2014_p7 = pneg %p2257_p11 }
  0x2b   : > { %p2013_p5 = scmp.ne.s32.totalorder %s2254_s17, %s2012_s29  ;;  %s2017_s10 = scalar_lea.hbm %s2956_s0, 512 }
  0x2c   : > { %p2018_p10 = scmp.lt.s32.totalorder %s2254_s17, %s2956_s0  ;;  %p2019_p2 = scmp.lt.s32.totalorder %s2017_s10, %s2012_s29 }
  0x2d   : > { %p2015_p9 = pnand %p2014_p7, %p2013_p5 }
  0x2e   : > { %p2020_p13 = por %p2019_p2, %p2018_p10 }
  0x2f   : > { %p2016_p12 = pneg %p2015_p9 }
  0x31   : > { %p2021_p0 = pnand %p2020_p13, %p2016_p12 }
  0x33   : > { %2024 = shalt.err (!%p2021_p0)
}
  0x34   : > { %s2025_s7 = scalar_lea.vmem %s165_s22, 256  ;;  %s2145_s8 = smov [#allocation2]  }
  0x35   : > { %p2026_p1 = scmp.ne.s32.totalorder %s165_s22, %s2025_s7  ;;  %s2030_s25 = sshll.u32 %s2145_s8, 4  ;;  %s2031_s25 = int_to_ptr.vmem [resolvable:$false] %s2030_s25 }
  0x36   : > { %s2032_s26 = scalar_lea.vmem %s2031_s25, 512  ;;  %p2033_p9 = scmp.lt.s32.totalorder %s165_s22, %s2031_s25 }
  0x37   : > { %p2028_p6 = pnand %p2026_p1, %p2014_p7  ;;  %p2034_p3 = scmp.lt.s32.totalorder %s2032_s26, %s2025_s7 }
  0x39   : > { %p2029_p5 = pneg %p2028_p6  ;;  %p2035_p4 = por %p2034_p3, %p2033_p9 }
  0x3b   : > { %p2036_p8 = pnand %p2035_p4, %p2029_p5 }
  0x3d   : > { %2039 = shalt.err (!%p2036_p8)
}
  0x3e   : > { %1731 = dma.hbm_to_vmem [thread:$0]  (!%p2257_p11), %s2254_s17, 256, %s165_s22, %s153_s28  }
  0x3f   : > { %s171_s29 = sand.u32 1, %s2140_s15   ;;  %s175_s30 = scalar_lea.vmem [#allocation5], %s2249_s9 }
  0x40   : > { %s183_s4 = sshll.u32 %s175_s30, 4  ;;  %s172_s10 = scalar_lea.sflag [#allocation6], %s171_s29  ;;  %s184_s4 = int_to_ptr.vmem [resolvable:$true] %s183_s4 }
  0x41   : > { %s2040_s11 = scalar_lea.hbm %s2264_s27, 256  ;;  %s2045_s8 = scalar_lea.hbm %s2957_s1, 512 }
  0x42   : > { %p2041_p1 = scmp.ne.s32.totalorder %s2264_s27, %s2040_s11  ;;  %p2046_p8 = scmp.lt.s32.totalorder %s2264_s27, %s2957_s1 }
  0x43   : > { %p2047_p3 = scmp.lt.s32.totalorder %s2045_s8, %s2040_s11 }
  0x44   : > { %p2043_p4 = pnand %p2041_p1, %p2014_p7 }
  0x45   : > { %p2048_p12 = por %p2047_p3, %p2046_p8 }
  0x46   : > { %p2044_p6 = pneg %p2043_p4 }
  0x48   : > { %p2049_p10 = pnand %p2048_p12, %p2044_p6 }
  0x4a   : > { %2052 = shalt.err (!%p2049_p10)
}
  0x4b   : > { %s2053_s9 = scalar_lea.vmem %s184_s4, 256  ;;  %s2146_s17 = smov [#allocation5]  }
  0x4c   : > { %p2054_p2 = scmp.ne.s32.totalorder %s184_s4, %s2053_s9  ;;  %s2058_s22 = sshll.u32 %s2146_s17, 4  ;;  %s2059_s22 = int_to_ptr.vmem [resolvable:$false] %s2058_s22 }
  0x4d   : > { %s2060_s28 = scalar_lea.vmem %s2059_s22, 512  ;;  %p2061_p5 = scmp.lt.s32.totalorder %s184_s4, %s2059_s22 }
  0x4e   : > { %p2056_p13 = pnand %p2054_p2, %p2014_p7  ;;  %p2062_p9 = scmp.lt.s32.totalorder %s2060_s28, %s2053_s9 }
  0x50   : > { %p2057_p0 = pneg %p2056_p13  ;;  %p2063_p1 = por %p2062_p9, %p2061_p5 }
  0x52   : > { %p2064_p4 = pnand %p2063_p1, %p2057_p0 }
  0x54   : > { %2067 = shalt.err (!%p2064_p4)
}
  0x55   : > { %1734 = dma.hbm_to_vmem [thread:$0]  (!%p2257_p11), %s2264_s27, 256, %s184_s4, %s172_s10  }
  0x56   : > { %p3041_p6 = scmp.ne.s32.totalorder %s3036_s20, 0 }
  0x58   : > { %192 = sbr.rel (%p3041_p6) target bundleno = 598 (0x256), region = 32 }
  0x5d   : > { %s2309_s29 = sand.u32 1, %s2132_s13   ;;  %p3042_p7 = scmp.ne.s32.totalorder %s3034_s18, 0 }
  0x5e   : > { %s2312_s30 = sshll.u32 %s2309_s29, 4  ;;  %s195_s11 = scalar_lea.sflag [#allocation3], %s2309_s29 }
  0x5f   : > { %s198_s21 = scalar_lea.vmem [#allocation2], %s2312_s30 }
  0x60   : > { %2111 = dma.done.wait (%p3042_p7), %s195_s11, 256  }
  0x61   : > { %2113 = vsyncadd (%p3042_p7), %s195_s11, 4294967040  ;;  %s203_s20 = sand.u32 1, %s2189_s16   ;;  %s207_s27 = scalar_lea.vmem [#allocation5], %s2312_s30 }
  0x62   : > { %s204_s23 = scalar_lea.sflag [#allocation6], %s203_s20 }
  0x63   : > { %2115 = dma.done.wait (%p3042_p7), %s204_s23, 256  }
  0x64   : > { %2117 = vsyncadd (%p3042_p7), %s204_s23, 4294967040  ;;  %p3043_p11 = scmp.eq.s32.totalorder %s2189_s16, 0 }
  0x66   : > { %2119 = dma.done.wait (%p3043_p11), [#allocation6], 16384   ;;  %p3044_p8 = pmov %p3043_p11 }
  0x67   : > { %v2330_v0 = vld [vmem:[#allocation7 + $0xe4] ss:$16 sps:$4 sm:$0xff]   ;;  %v2335_v2 = vld [vmem:[#allocation7 + $0xe0] ss:$16 sps:$4 sm:$0xff]   ;;  %v368_v48 = vld [vmem:[%s198_s21 + $0x8] sm:$0xff]  ;;  %s1713_s18 = sshll.u32 %s2189_s16, 8 }
  0x68   : > { %2121 = vsyncadd (%p3044_p8), [#allocation6], 4294950912  ;;  %v2332_v1 = vld [vmem:[#allocation7 + $0x2e4] ss:$16 sps:$4 sm:$0xff]   ;;  %1023 = vmatprep.subr.bf16.mxu0 %v2330_v0  ;;  %v2337_v3 = vld [vmem:[#allocation7 + $0x2e0] ss:$16 sps:$4 sm:$0xff]   ;;  %v1573_v51 = vcombine.high %v368_v48, %v368_v48  ;;  %s2919_s25 = scalar_lea.hbm %s2959_s3, %s1713_s18 }
  0x69   : > { %1064 = vmatprep.subr.bf16.mxu1 %v2332_v1  ;;  %v2340_v4 = vld [vmem:[#allocation7 + $0xc4] ss:$16 sps:$4 sm:$0xff]   ;;  %1024 = vmatpush1.bf16.msra.mxu0 %v2335_v2  ;;  %v2346_v6 = vld [vmem:[#allocation7 + $0xc0] ss:$16 sps:$4 sm:$0xff]   ;;  %s238_s4 = scalar_lea.vmem [#allocation8], %s2312_s30  ;;  %s1439_s26 = scalar_lea.sflag [#allocation4], %s2309_s29 }
  0x6a   : > { %1065 = vmatpush1.bf16.msra.mxu1 %v2337_v3  ;;  %v2344_v5 = vld [vmem:[#allocation7 + $0x2c4] ss:$16 sps:$4 sm:$0xff]   ;;  %1025 = vmatprep.subr.bf16.mxu0 %v2340_v4  ;;  %v2349_v7 = vld [vmem:[#allocation7 + $0x2c0] ss:$16 sps:$4 sm:$0xff]   ;;  %s1453_s10 = sshll.u32 %s238_s4, 4  ;;  %p3185_p12 = scmp.ne.s32.totalorder %s3039_s6, 0  ;;  %s1454_s10 = int_to_ptr.vmem [resolvable:$true] %s1453_s10 }
  0x6b   : > { %1066 = vmatprep.subr.bf16.mxu1 %v2344_v5  ;;  %v2352_v8 = vld [vmem:[#allocation7 + $0xa4] ss:$16 sps:$4 sm:$0xff]   ;;  %v2356_v10 = vld [vmem:[#allocation7 + $0xa0] ss:$16 sps:$4 sm:$0xff]   ;;  %1096 = vmatprep.mubr.bf16.mxu1 %v1573_v51  ;;  %s2068_s9 = scalar_lea.vmem %s1454_s10, 256  ;;  %s2147_s16 = smov [#allocation8]  }
  0x6c   : > { %v2354_v9 = vld [vmem:[#allocation7 + $0x2a4] ss:$16 sps:$4 sm:$0xff]   ;;  %v2358_v11 = vld [vmem:[#allocation7 + $0x2a0] ss:$16 sps:$4 sm:$0xff]   ;;  %p2069_p3 = scmp.ne.s32.totalorder %s1454_s10, %s2068_s9  ;;  %s2072_s17 = sshll.u32 %s2147_s16, 4  ;;  %s2073_s17 = int_to_ptr.vmem [resolvable:$false] %s2072_s17 }
  0x6d   : > { %1026 = vmatpush1.bf16.msra.mxu0 %v2346_v6  ;;  %v2362_v12 = vld [vmem:[#allocation7 + $0x84] ss:$16 sps:$4 sm:$0xff]   ;;  %v2368_v14 = vld [vmem:[#allocation7 + $0x80] ss:$16 sps:$4 sm:$0xff]   ;;  %s2074_s22 = scalar_lea.vmem %s2073_s17, 512  ;;  %p2075_p13 = scmp.lt.s32.totalorder %s1454_s10, %s2073_s17 }
  0x6e   : > { %1067 = vmatpush1.bf16.msra.mxu1 %v2349_v7  ;;  %1027 = vmatprep.subr.bf16.mxu0 %v2352_v8  ;;  %v2366_v13 = vld [vmem:[#allocation7 + $0x284] ss:$16 sps:$4 sm:$0xff]   ;;  %v2372_v15 = vld [vmem:[#allocation7 + $0x280] ss:$16 sps:$4 sm:$0xff]   ;;  %p2070_p10 = pnand %p2069_p3, %p3185_p12  ;;  %p2076_p0 = scmp.lt.s32.totalorder %s2074_s22, %s2068_s9 }
  0x6f   : > { %1068 = vmatprep.subr.bf16.mxu1 %v2354_v9  ;;  %v2374_v16 = vld [vmem:[#allocation7 + $0x64] ss:$16 sps:$4 sm:$0xff]   ;;  %v2380_v18 = vld [vmem:[#allocation7 + $0x60] ss:$16 sps:$4 sm:$0xff]  }
  0x70   : > { %v2378_v17 = vld [vmem:[#allocation7 + $0x264] ss:$16 sps:$4 sm:$0xff]   ;;  %v2382_v19 = vld [vmem:[#allocation7 + $0x260] ss:$16 sps:$4 sm:$0xff]   ;;  %p2071_p2 = pneg %p2070_p10  ;;  %p2077_p5 = por %p2076_p0, %p2075_p13 }
  0x71   : > { %1028 = vmatpush1.bf16.msra.mxu0 %v2356_v10  ;;  %v2386_v20 = vld [vmem:[#allocation7 + $0x44] ss:$16 sps:$4 sm:$0xff]   ;;  %v2392_v22 = vld [vmem:[#allocation7 + $0x40] ss:$16 sps:$4 sm:$0xff]  }
  0x72   : > { %1069 = vmatpush1.bf16.msra.mxu1 %v2358_v11  ;;  %1029 = vmatprep.subr.bf16.mxu0 %v2362_v12  ;;  %v2390_v21 = vld [vmem:[#allocation7 + $0x244] ss:$16 sps:$4 sm:$0xff]   ;;  %v2396_v23 = vld [vmem:[#allocation7 + $0x240] ss:$16 sps:$4 sm:$0xff]   ;;  %p2078_p9 = pnand %p2077_p5, %p2071_p2 }
  0x73   : > { %1070 = vmatprep.subr.bf16.mxu1 %v2366_v13  ;;  %v2398_v24 = vld [vmem:[#allocation7 + $0x24] ss:$16 sps:$4 sm:$0xff]   ;;  %v2404_v26 = vld [vmem:[#allocation7 + $0x20] ss:$16 sps:$4 sm:$0xff]  }
  0x74   : > { %v2402_v25 = vld [vmem:[#allocation7 + $0x224] ss:$16 sps:$4 sm:$0xff]   ;;  %v2406_v27 = vld [vmem:[#allocation7 + $0x220] ss:$16 sps:$4 sm:$0xff]  }
  0x75   : > { %1030 = vmatpush1.bf16.msra.mxu0 %v2368_v14  ;;  %v2410_v28 = vld [vmem:[#allocation7 + $0x4] ss:$16 sps:$4 sm:$0xff]   ;;  %v2416_v30 = vld [vmem:[#allocation7] ss:$16 sps:$4 sm:$0xff]  }
  0x76   : > { %1071 = vmatpush1.bf16.msra.mxu1 %v2372_v15  ;;  %1031 = vmatprep.subr.bf16.mxu0 %v2374_v16  ;;  %v2414_v29 = vld [vmem:[#allocation7 + $0x204] ss:$16 sps:$4 sm:$0xff]   ;;  %v2420_v31 = vld [vmem:[#allocation7 + $0x200] ss:$16 sps:$4 sm:$0xff]  }
  0x77   : > { %1072 = vmatprep.subr.bf16.mxu1 %v2378_v17  ;;  %v2422_v32 = vld [vmem:[#allocation7 + $0x1e4] ss:$16 sps:$4 sm:$0xff]   ;;  %v2428_v34 = vld [vmem:[#allocation7 + $0x1e0] ss:$16 sps:$4 sm:$0xff]  }
  0x78   : > { %v2426_v33 = vld [vmem:[#allocation7 + $0x3e4] ss:$16 sps:$4 sm:$0xff]   ;;  %v2430_v35 = vld [vmem:[#allocation7 + $0x3e0] ss:$16 sps:$4 sm:$0xff]  }
  0x79   : > { %1032 = vmatpush1.bf16.msra.mxu0 %v2380_v18  ;;  %v2434_v36 = vld [vmem:[#allocation7 + $0x1c4] ss:$16 sps:$4 sm:$0xff]   ;;  %v2440_v38 = vld [vmem:[#allocation7 + $0x1c0] ss:$16 sps:$4 sm:$0xff]  }
  0x7a   : > { %1073 = vmatpush1.bf16.msra.mxu1 %v2382_v19  ;;  %1033 = vmatprep.subr.bf16.mxu0 %v2386_v20  ;;  %v2438_v37 = vld [vmem:[#allocation7 + $0x3c4] ss:$16 sps:$4 sm:$0xff]   ;;  %v2444_v39 = vld [vmem:[#allocation7 + $0x3c0] ss:$16 sps:$4 sm:$0xff]  }
  0x7b   : > { %1074 = vmatprep.subr.bf16.mxu1 %v2390_v21  ;;  %v2446_v40 = vld [vmem:[#allocation7 + $0x1a4] ss:$16 sps:$4 sm:$0xff]   ;;  %v2452_v42 = vld [vmem:[#allocation7 + $0x1a0] ss:$16 sps:$4 sm:$0xff]  }
  0x7c   : > { %v2450_v41 = vld [vmem:[#allocation7 + $0x3a4] ss:$16 sps:$4 sm:$0xff]   ;;  %v2454_v43 = vld [vmem:[#allocation7 + $0x3a0] ss:$16 sps:$4 sm:$0xff]  }
  0x7d   : > { %1034 = vmatpush1.bf16.msra.mxu0 %v2392_v22  ;;  %v2458_v44 = vld [vmem:[#allocation7 + $0x184] ss:$16 sps:$4 sm:$0xff]   ;;  %v2472_v49 = vld [vmem:[#allocation7 + $0x180] ss:$16 sps:$4 sm:$0xff]  }
  0x7e   : > { %1075 = vmatpush1.bf16.msra.mxu1 %v2396_v23  ;;  %1035 = vmatprep.subr.bf16.mxu0 %v2398_v24  ;;  %v2462_v45 = vld [vmem:[#allocation7 + $0x384] ss:$16 sps:$4 sm:$0xff]   ;;  %v2474_v50 = vld [vmem:[#allocation7 + $0x380] ss:$16 sps:$4 sm:$0xff]  }
  0x7f   : > { %1076 = vmatprep.subr.bf16.mxu1 %v2402_v25  ;;  %v367_v46 = vld [vmem:[%s198_s21] sm:$0xff] }
  0x80   : > { %v2466_v47 = vcombine.high %v367_v46, %v367_v46  ;;  %v2478_v52 = vld [vmem:[#allocation7 + $0x164] ss:$16 sps:$4 sm:$0xff]   ;;  %v2485_v54 = vld [vmem:[#allocation7 + $0x160] ss:$16 sps:$4 sm:$0xff]  }
  0x81   : > { %1036 = vmatpush1.bf16.msra.mxu0 %v2404_v26  ;;  %v2480_v53 = vld [vmem:[#allocation7 + $0x364] ss:$16 sps:$4 sm:$0xff]   ;;  %3045 = vst [vmem:[#allocation13_spill] sm:$0xff] %v2485_v54  ;;  %v2487_v55 = vld [vmem:[#allocation7 + $0x360] ss:$16 sps:$4 sm:$0xff]  }
  0x82   : > { %1077 = vmatpush1.bf16.msra.mxu1 %v2406_v27  ;;  %1037 = vmatprep.subr.bf16.mxu0 %v2410_v28  ;;  %3046 = vst [vmem:[#allocation14_spill] sm:$0xff] %v2487_v55  ;;  %v2491_v56 = vld [vmem:[#allocation7 + $0x144] ss:$16 sps:$4 sm:$0xff]   ;;  %v2497_v58 = vld [vmem:[#allocation7 + $0x140] ss:$16 sps:$4 sm:$0xff]  }
  0x83   : > { %1078 = vmatprep.subr.bf16.mxu1 %v2414_v29  ;;  %1055 = vmatprep.mubr.bf16.mxu0 %v2466_v47  ;;  %3047 = vst [vmem:[#allocation15_spill] sm:$0xff] %v2491_v56  ;;  %v2493_v57 = vld [vmem:[#allocation7 + $0x344] ss:$16 sps:$4 sm:$0xff]   ;;  %3049 = vst [vmem:[#allocation17_spill] sm:$0xff] %v2497_v58  ;;  %v2499_v59 = vld [vmem:[#allocation7 + $0x340] ss:$16 sps:$4 sm:$0xff]  }
  0x84   : > { %3048 = vst [vmem:[#allocation16_spill] sm:$0xff] %v2493_v57  ;;  %3050 = vst [vmem:[#allocation18_spill] sm:$0xff] %v2499_v59  ;;  %v2503_v60 = vld [vmem:[#allocation7 + $0x124] ss:$16 sps:$4 sm:$0xff]   ;;  %v2509_v62 = vld [vmem:[#allocation7 + $0x120] ss:$16 sps:$4 sm:$0xff]  }
  0x85   : > { %1038 = vmatpush1.bf16.msra.mxu0 %v2416_v30  ;;  %3051 = vst [vmem:[#allocation19_spill] sm:$0xff] %v2503_v60  ;;  %v2505_v61 = vld [vmem:[#allocation7 + $0x324] ss:$16 sps:$4 sm:$0xff]   ;;  %3053 = vst [vmem:[#allocation21_spill] sm:$0xff] %v2509_v62  ;;  %v2511_v63 = vld [vmem:[#allocation7 + $0x320] ss:$16 sps:$4 sm:$0xff]  }
  0x86   : > { %1079 = vmatpush1.bf16.msra.mxu1 %v2420_v31  ;;  %1039 = vmatprep.subr.bf16.mxu0 %v2422_v32  ;;  %3052 = vst [vmem:[#allocation20_spill] sm:$0xff] %v2505_v61  ;;  %3054 = vst [vmem:[#allocation22_spill] sm:$0xff] %v2511_v63 }
  0x87   : > { %1080 = vmatprep.subr.bf16.mxu1 %v2426_v33 }
  0x89   : > { %1040 = vmatpush2.bf16.msra.mxu0 %v2428_v34 }
  0x8a   : > { %1081 = vmatpush2.bf16.msra.mxu1 %v2430_v35  ;;  %1041 = vmatprep.subr.bf16.mxu0 %v2434_v36 }
  0x8b   : > { %1082 = vmatprep.subr.bf16.mxu1 %v2438_v37 }
  0x8d   : > { %1042 = vmatpush2.bf16.msra.mxu0 %v2440_v38 }
  0x8e   : > { %1083 = vmatpush2.bf16.msra.mxu1 %v2444_v39  ;;  %1043 = vmatprep.subr.bf16.mxu0 %v2446_v40 }
  0x8f   : > { %1084 = vmatprep.subr.bf16.mxu1 %v2450_v41 }
  0x91   : > { %1044 = vmatpush2.bf16.msra.mxu0 %v2452_v42 }
  0x92   : > { %1085 = vmatpush2.bf16.msra.mxu1 %v2454_v43  ;;  %1045 = vmatprep.subr.bf16.mxu0 %v2458_v44 }
  0x93   : > { %1086 = vmatprep.subr.bf16.mxu1 %v2462_v45 }
  0x95   : > { %1046 = vmatpush2.bf16.msra.mxu0 %v2472_v49 }
  0x96   : > { %1087 = vmatpush2.bf16.msra.mxu1 %v2474_v50  ;;  %1047 = vmatprep.subr.bf16.mxu0 %v2478_v52 }
  0x97   : > { %1088 = vmatprep.subr.bf16.mxu1 %v2480_v53 }
  0x99   : > { %1048 = vmatpush2.bf16.msra.mxu0 %v2485_v54  ;;  %v2533_v54 = vcombine.low %v368_v48, %v368_v48  ;;  %v2553_v48 = vld [vmem:[#allocation7 + $0x2c8] ss:$16 sps:$4 sm:$0xff]  }
  0x9a   : > { %1089 = vmatpush2.bf16.msra.mxu1 %v2487_v55  ;;  %1049 = vmatprep.subr.bf16.mxu0 %v2491_v56  ;;  %v2515_v55 = vld [vmem:[#allocation7 + $0x104] ss:$16 sps:$4 sm:$0xff]   ;;  %3063 = vst [vmem:[#allocation31_spill] sm:$0xff] %v2553_v48 }
  0x9b   : > { %1090 = vmatprep.subr.bf16.mxu1 %v2493_v57  ;;  %3055 = vst [vmem:[#allocation23_spill] sm:$0xff] %v2515_v55  ;;  %v2517_v56 = vld [vmem:[#allocation7 + $0x304] ss:$16 sps:$4 sm:$0xff]   ;;  %v2521_v57 = vld [vmem:[#allocation7 + $0x100] ss:$16 sps:$4 sm:$0xff]  }
  0x9c   : > { %3056 = vst [vmem:[#allocation24_spill] sm:$0xff] %v2517_v56 }
  0x9d   : > { %1050 = vmatpush2.bf16.msra.mxu0 %v2497_v58  ;;  %v2523_v58 = vld [vmem:[#allocation7 + $0x300] ss:$16 sps:$4 sm:$0xff]  }
  0x9e   : > { %1091 = vmatpush2.bf16.msra.mxu1 %v2499_v59  ;;  %1051 = vmatprep.subr.bf16.mxu0 %v2503_v60  ;;  %v2527_v59 = vld [vmem:[#allocation7 + $0xec] ss:$16 sps:$4 sm:$0xff]  }
  0x9f   : > { %1092 = vmatprep.subr.bf16.mxu1 %v2505_v61  ;;  %3057 = vst [vmem:[#allocation25_spill] sm:$0xff] %v2527_v59  ;;  %v2529_v60 = vld [vmem:[#allocation7 + $0x2ec] ss:$16 sps:$4 sm:$0xff]   ;;  %v2531_v61 = vcombine.low %v367_v46, %v367_v46  ;;  %v2551_v46 = vld [vmem:[#allocation7 + $0xc8] ss:$16 sps:$4 sm:$0xff]  }
  0xa0   : > { %3058 = vst [vmem:[#allocation26_spill] sm:$0xff] %v2529_v60 }
  0xa1   : > { %1052 = vmatpush2.bf16.msra.mxu0 %v2509_v62  ;;  %v2539_v62 = vld [vmem:[#allocation7 + $0x2e8] ss:$16 sps:$4 sm:$0xff]  }
  0xa2   : > { %1093 = vmatpush2.bf16.msra.mxu1 %v2511_v63  ;;  %1053 = vmatprep.subr.bf16.mxu0 %v2515_v55  ;;  %v2537_v63 = vld [vmem:[#allocation7 + $0xe8] ss:$16 sps:$4 sm:$0xff]   ;;  %3060 = vst [vmem:[#allocation28_spill] sm:$0xff] %v2539_v62  ;;  %v2545_v55 = vld [vmem:[#allocation7 + $0x2cc] ss:$16 sps:$4 sm:$0xff]  }
  0xa3   : > { %1094 = vmatprep.subr.bf16.mxu1 %v2517_v56  ;;  %3059 = vst [vmem:[#allocation27_spill] sm:$0xff] %v2537_v63  ;;  %v2543_v56 = vld [vmem:[#allocation7 + $0xcc] ss:$16 sps:$4 sm:$0xff]   ;;  %3062 = vst [vmem:[#allocation30_spill] sm:$0xff] %v2545_v55 }
  0xa4   : > { %3061 = vst [vmem:[#allocation29_spill] sm:$0xff] %v2543_v56 }
  0xa5   : > { %1054 = vmatpush2.bf16.msra.mxu0 %v2521_v57 }
  0xa6   : > { %1095 = vmatpush2.bf16.msra.mxu1 %v2523_v58  ;;  %1105 = vmatprep.subr.bf16.mxu0 %v2527_v59  ;;  %v2559_v59 = vld [vmem:[#allocation7 + $0x2ac] ss:$16 sps:$4 sm:$0xff]  }
  0xa7   : > { %1146 = vmatprep.subr.bf16.mxu1 %v2529_v60  ;;  %v2557_v60 = vld [vmem:[#allocation7 + $0xac] ss:$16 sps:$4 sm:$0xff]   ;;  %3065 = vst [vmem:[#allocation33_spill] sm:$0xff] %v2559_v59 }
  0xa8   : > { %1056 = vmatmul.mubr.bf16.vlgmr.msra.gmra.mxu0 %v2531_v61  ;;  %3064 = vst [vmem:[#allocation32_spill] sm:$0xff] %v2557_v60 }
  0xa9   : > { %1097 = vmatmul.mubr.bf16.vlgmr.msra.gmra.mxu1 %v2533_v54  ;;  %1106 = vmatpush1.bf16.msra.mxu0 %v2537_v63  ;;  %v2566_v63 = vld [vmem:[#allocation7 + $0x2a8] ss:$16 sps:$4 sm:$0xff]  }
  0xaa   : > { %1147 = vmatpush1.bf16.msra.mxu1 %v2539_v62  ;;  %1107 = vmatprep.subr.bf16.mxu0 %v2543_v56  ;;  %v2564_v62 = vld [vmem:[#allocation7 + $0xa8] ss:$16 sps:$4 sm:$0xff]   ;;  %3067 = vst [vmem:[#allocation35_spill] sm:$0xff] %v2566_v63  ;;  %v2572_v56 = vld [vmem:[#allocation7 + $0x28c] ss:$16 sps:$4 sm:$0xff]  }
  0xab   : > { %1148 = vmatprep.subr.bf16.mxu1 %v2545_v55  ;;  %1137 = vmatprep.mubr.bf16.mxu0 %v2466_v47  ;;  %3066 = vst [vmem:[#allocation34_spill] sm:$0xff] %v2564_v62  ;;  %v2570_v55 = vld [vmem:[#allocation7 + $0x8c] ss:$16 sps:$4 sm:$0xff]   ;;  %3069 = vst [vmem:[#allocation37_spill] sm:$0xff] %v2572_v56  ;;  %v2576_v47 = vld [vmem:[#allocation7 + $0x88] ss:$16 sps:$4 sm:$0xff]  }
  0xac   : > { %1178 = vmatprep.mubr.bf16.mxu1 %v1573_v51  ;;  %3068 = vst [vmem:[#allocation36_spill] sm:$0xff] %v2570_v55  ;;  %3070 = vst [vmem:[#allocation38_spill] sm:$0xff] %v2576_v47  ;;  %v2578_v51 = vld [vmem:[#allocation7 + $0x288] ss:$16 sps:$4 sm:$0xff]  }
  0xad   : > { %1108 = vmatpush1.bf16.msra.mxu0 %v2551_v46  ;;  %3071 = vst [vmem:[#allocation39_spill] sm:$0xff] %v2578_v51 }
  0xae   : > { %1149 = vmatpush1.bf16.msra.mxu1 %v2553_v48  ;;  %1109 = vmatprep.subr.bf16.mxu0 %v2557_v60  ;;  %v2582_v48 = vld [vmem:[#allocation7 + $0x6c] ss:$16 sps:$4 sm:$0xff]  }
  0xaf   : > { %1150 = vmatprep.subr.bf16.mxu1 %v2559_v59  ;;  %3072 = vst [vmem:[#allocation40_spill] sm:$0xff] %v2582_v48  ;;  %v2584_v60 = vld [vmem:[#allocation7 + $0x26c] ss:$16 sps:$4 sm:$0xff]   ;;  %v2588_v59 = vld [vmem:[#allocation7 + $0x68] ss:$16 sps:$4 sm:$0xff]  }
  0xb0   : > { %3073 = vst [vmem:[#allocation41_spill] sm:$0xff] %v2584_v60  ;;  %3074 = vst [vmem:[#allocation42_spill] sm:$0xff] %v2588_v59 }
  0xb1   : > { %1110 = vmatpush1.bf16.msra.mxu0 %v2564_v62  ;;  %v2590_v62 = vld [vmem:[#allocation7 + $0x268] ss:$16 sps:$4 sm:$0xff]  }
  0xb2   : > { %1151 = vmatpush1.bf16.msra.mxu1 %v2566_v63  ;;  %1111 = vmatprep.subr.bf16.mxu0 %v2570_v55  ;;  %3075 = vst [vmem:[#allocation43_spill] sm:$0xff] %v2590_v62  ;;  %v2594_v63 = vld [vmem:[#allocation7 + $0x4c] ss:$16 sps:$4 sm:$0xff]  }
  0xb3   : > { %1152 = vmatprep.subr.bf16.mxu1 %v2572_v56  ;;  %3076 = vst [vmem:[#allocation44_spill] sm:$0xff] %v2594_v63  ;;  %v2596_v55 = vld [vmem:[#allocation7 + $0x24c] ss:$16 sps:$4 sm:$0xff]   ;;  %v2600_v56 = vld [vmem:[#allocation7 + $0x48] ss:$16 sps:$4 sm:$0xff]  }
  0xb4   : > { %3077 = vst [vmem:[#allocation45_spill] sm:$0xff] %v2596_v55  ;;  %3078 = vst [vmem:[#allocation46_spill] sm:$0xff] %v2600_v56 }
  0xb5   : > { %1112 = vmatpush1.bf16.msra.mxu0 %v2576_v47  ;;  %v2602_v47 = vld [vmem:[#allocation7 + $0x248] ss:$16 sps:$4 sm:$0xff]  }
  0xb6   : > { %1153 = vmatpush1.bf16.msra.mxu1 %v2578_v51  ;;  %1113 = vmatprep.subr.bf16.mxu0 %v2582_v48  ;;  %3079 = vst [vmem:[#allocation47_spill] sm:$0xff] %v2602_v47  ;;  %v2606_v51 = vld [vmem:[#allocation7 + $0x2c] ss:$16 sps:$4 sm:$0xff]  }
  0xb7   : > { %1154 = vmatprep.subr.bf16.mxu1 %v2584_v60  ;;  %3080 = vst [vmem:[#allocation48_spill] sm:$0xff] %v2606_v51  ;;  %v2608_v48 = vld [vmem:[#allocation7 + $0x22c] ss:$16 sps:$4 sm:$0xff]   ;;  %v2612_v60 = vld [vmem:[#allocation7 + $0x28] ss:$16 sps:$4 sm:$0xff]  }
  0xb8   : > { %3081 = vst [vmem:[#allocation49_spill] sm:$0xff] %v2608_v48  ;;  %3082 = vst [vmem:[#allocation50_spill] sm:$0xff] %v2612_v60 }
  0xb9   : > { %1114 = vmatpush1.bf16.msra.mxu0 %v2588_v59  ;;  %v2614_v59 = vld [vmem:[#allocation7 + $0x228] ss:$16 sps:$4 sm:$0xff]  }
  0xba   : > { %1155 = vmatpush1.bf16.msra.mxu1 %v2590_v62  ;;  %1115 = vmatprep.subr.bf16.mxu0 %v2594_v63  ;;  %3083 = vst [vmem:[#allocation51_spill] sm:$0xff] %v2614_v59  ;;  %v2618_v62 = vld [vmem:[#allocation7 + $0xc] ss:$16 sps:$4 sm:$0xff]  }
  0xbb   : > { %1156 = vmatprep.subr.bf16.mxu1 %v2596_v55  ;;  %3084 = vst [vmem:[#allocation52_spill] sm:$0xff] %v2618_v62  ;;  %v2620_v63 = vld [vmem:[#allocation7 + $0x20c] ss:$16 sps:$4 sm:$0xff]   ;;  %v2624_v55 = vld [vmem:[#allocation7 + $0x8] ss:$16 sps:$4 sm:$0xff]  }
  0xbc   : > { %3085 = vst [vmem:[#allocation53_spill] sm:$0xff] %v2620_v63  ;;  %3086 = vst [vmem:[#allocation54_spill] sm:$0xff] %v2624_v55 }
  0xbd   : > { %1116 = vmatpush1.bf16.msra.mxu0 %v2600_v56  ;;  %v2626_v56 = vld [vmem:[#allocation7 + $0x208] ss:$16 sps:$4 sm:$0xff]  }
  0xbe   : > { %1157 = vmatpush1.bf16.msra.mxu1 %v2602_v47  ;;  %1117 = vmatprep.subr.bf16.mxu0 %v2606_v51  ;;  %3087 = vst [vmem:[#allocation55_spill] sm:$0xff] %v2626_v56  ;;  %v2630_v47 = vld [vmem:[#allocation7 + $0x1ec] ss:$16 sps:$4 sm:$0xff]  }
  0xbf   : > { %1158 = vmatprep.subr.bf16.mxu1 %v2608_v48  ;;  %3088 = vst [vmem:[#allocation56_spill] sm:$0xff] %v2630_v47  ;;  %v2632_v51 = vld [vmem:[#allocation7 + $0x3ec] ss:$16 sps:$4 sm:$0xff]   ;;  %v2636_v48 = vld [vmem:[#allocation7 + $0x1e8] ss:$16 sps:$4 sm:$0xff]  }
  0xc0   : > { %3089 = vst [vmem:[#allocation57_spill] sm:$0xff] %v2632_v51  ;;  %3090 = vst [vmem:[#allocation58_spill] sm:$0xff] %v2636_v48 }
  0xc1   : > { %1118 = vmatpush1.bf16.msra.mxu0 %v2612_v60  ;;  %v2638_v60 = vld [vmem:[#allocation7 + $0x3e8] ss:$16 sps:$4 sm:$0xff]  }
  0xc2   : > { %1159 = vmatpush1.bf16.msra.mxu1 %v2614_v59  ;;  %1119 = vmatprep.subr.bf16.mxu0 %v2618_v62  ;;  %3091 = vst [vmem:[#allocation59_spill] sm:$0xff] %v2638_v60  ;;  %v2642_v59 = vld [vmem:[#allocation7 + $0x1cc] ss:$16 sps:$4 sm:$0xff]  }
  0xc3   : > { %1160 = vmatprep.subr.bf16.mxu1 %v2620_v63  ;;  %3092 = vst [vmem:[#allocation60_spill] sm:$0xff] %v2642_v59  ;;  %v2644_v62 = vld [vmem:[#allocation7 + $0x3cc] ss:$16 sps:$4 sm:$0xff]   ;;  %v2648_v63 = vld [vmem:[#allocation7 + $0x1c8] ss:$16 sps:$4 sm:$0xff]  }
  0xc4   : > { %3093 = vst [vmem:[#allocation61_spill] sm:$0xff] %v2644_v62  ;;  %3094 = vst [vmem:[#allocation62_spill] sm:$0xff] %v2648_v63 }
  0xc5   : > { %1120 = vmatpush1.bf16.msra.mxu0 %v2624_v55  ;;  %v2650_v55 = vld [vmem:[#allocation7 + $0x3c8] ss:$16 sps:$4 sm:$0xff]  }
  0xc6   : > { %1161 = vmatpush1.bf16.msra.mxu1 %v2626_v56  ;;  %1121 = vmatprep.subr.bf16.mxu0 %v2630_v47  ;;  %3095 = vst [vmem:[#allocation63_spill] sm:$0xff] %v2650_v55  ;;  %v2654_v56 = vld [vmem:[#allocation7 + $0x1ac] ss:$16 sps:$4 sm:$0xff]  }
  0xc7   : > { %1162 = vmatprep.subr.bf16.mxu1 %v2632_v51  ;;  %3096 = vst [vmem:[#allocation64_spill] sm:$0xff] %v2654_v56  ;;  %v2656_v47 = vld [vmem:[#allocation7 + $0x3ac] ss:$16 sps:$4 sm:$0xff]   ;;  %v2660_v51 = vld [vmem:[#allocation7 + $0x1a8] ss:$16 sps:$4 sm:$0xff]  }
  0xc8   : > { %3097 = vst [vmem:[#allocation65_spill] sm:$0xff] %v2656_v47  ;;  %3098 = vst [vmem:[#allocation66_spill] sm:$0xff] %v2660_v51 }
  0xc9   : > { %1122 = vmatpush2.bf16.msra.mxu0 %v2636_v48  ;;  %v2662_v48 = vld [vmem:[#allocation7 + $0x3a8] ss:$16 sps:$4 sm:$0xff]  }
  0xca   : > { %1163 = vmatpush2.bf16.msra.mxu1 %v2638_v60  ;;  %1123 = vmatprep.subr.bf16.mxu0 %v2642_v59  ;;  %3099 = vst [vmem:[#allocation67_spill] sm:$0xff] %v2662_v48  ;;  %v2666_v60 = vld [vmem:[#allocation7 + $0x18c] ss:$16 sps:$4 sm:$0xff]  }
  0xcb   : > { %1164 = vmatprep.subr.bf16.mxu1 %v2644_v62  ;;  %3100 = vst [vmem:[#allocation68_spill] sm:$0xff] %v2666_v60  ;;  %v2668_v59 = vld [vmem:[#allocation7 + $0x38c] ss:$16 sps:$4 sm:$0xff]   ;;  %v2672_v62 = vld [vmem:[#allocation7 + $0x188] ss:$16 sps:$4 sm:$0xff]  }
  0xcc   : > { %3101 = vst [vmem:[#allocation69_spill] sm:$0xff] %v2668_v59  ;;  %3102 = vst [vmem:[#allocation70_spill] sm:$0xff] %v2672_v62 }
  0xcd   : > { %1124 = vmatpush2.bf16.msra.mxu0 %v2648_v63  ;;  %v2674_v63 = vld [vmem:[#allocation7 + $0x388] ss:$16 sps:$4 sm:$0xff]  }
  0xce   : > { %1165 = vmatpush2.bf16.msra.mxu1 %v2650_v55  ;;  %1125 = vmatprep.subr.bf16.mxu0 %v2654_v56  ;;  %3103 = vst [vmem:[#allocation71_spill] sm:$0xff] %v2674_v63  ;;  %v2678_v55 = vld [vmem:[#allocation7 + $0x16c] ss:$16 sps:$4 sm:$0xff]  }
  0xcf   : > { %1166 = vmatprep.subr.bf16.mxu1 %v2656_v47  ;;  %3104 = vst [vmem:[#allocation72_spill] sm:$0xff] %v2678_v55  ;;  %v2680_v56 = vld [vmem:[#allocation7 + $0x36c] ss:$16 sps:$4 sm:$0xff]   ;;  %v2684_v47 = vld [vmem:[#allocation7 + $0x168] ss:$16 sps:$4 sm:$0xff]  }
  0xd0   : > { %3105 = vst [vmem:[#allocation73_spill] sm:$0xff] %v2680_v56  ;;  %3106 = vst [vmem:[#allocation74_spill] sm:$0xff] %v2684_v47 }
  0xd1   : > { %1126 = vmatpush2.bf16.msra.mxu0 %v2660_v51  ;;  %v2686_v51 = vld [vmem:[#allocation7 + $0x368] ss:$16 sps:$4 sm:$0xff]  }
  0xd2   : > { %1167 = vmatpush2.bf16.msra.mxu1 %v2662_v48  ;;  %1127 = vmatprep.subr.bf16.mxu0 %v2666_v60  ;;  %3107 = vst [vmem:[#allocation75_spill] sm:$0xff] %v2686_v51  ;;  %v2690_v48 = vld [vmem:[#allocation7 + $0x14c] ss:$16 sps:$4 sm:$0xff]  }
  0xd3   : > { %1168 = vmatprep.subr.bf16.mxu1 %v2668_v59  ;;  %3108 = vst [vmem:[#allocation76_spill] sm:$0xff] %v2690_v48  ;;  %v2692_v60 = vld [vmem:[#allocation7 + $0x34c] ss:$16 sps:$4 sm:$0xff]   ;;  %v2696_v59 = vld [vmem:[#allocation7 + $0x148] ss:$16 sps:$4 sm:$0xff]  }
  0xd4   : > { %3109 = vst [vmem:[#allocation77_spill] sm:$0xff] %v2692_v60  ;;  %3110 = vst [vmem:[#allocation78_spill] sm:$0xff] %v2696_v59 }
  0xd5   : > { %1128 = vmatpush2.bf16.msra.mxu0 %v2672_v62  ;;  %v2698_v62 = vld [vmem:[#allocation7 + $0x348] ss:$16 sps:$4 sm:$0xff]  }
  0xd6   : > { %1169 = vmatpush2.bf16.msra.mxu1 %v2674_v63  ;;  %1129 = vmatprep.subr.bf16.mxu0 %v2678_v55  ;;  %v2702_v63 = vld [vmem:[#allocation7 + $0x12c] ss:$16 sps:$4 sm:$0xff]   ;;  %v2720_v55 = vld [vmem:[#allocation7 + $0x108] ss:$16 sps:$4 sm:$0xff]  }
  0xd7   : > { %1170 = vmatprep.subr.bf16.mxu1 %v2680_v56  ;;  %3111 = vst [vmem:[#allocation79_spill] sm:$0xff] %v2702_v63  ;;  %v2704_v56 = vld [vmem:[#allocation7 + $0x32c] ss:$16 sps:$4 sm:$0xff]  }
  0xd8   : > { %3112 = vst [vmem:[#allocation80_spill] sm:$0xff] %v2704_v56 }
  0xd9   : > { %1130 = vmatpush2.bf16.msra.mxu0 %v2684_v47  ;;  %v2708_v47 = vld [vmem:[#allocation7 + $0x128] ss:$16 sps:$4 sm:$0xff]  }
  0xda   : > { %1171 = vmatpush2.bf16.msra.mxu1 %v2686_v51  ;;  %1131 = vmatprep.subr.bf16.mxu0 %v2690_v48  ;;  %v2710_v51 = vld [vmem:[#allocation7 + $0x328] ss:$16 sps:$4 sm:$0xff]   ;;  %v2714_v48 = vld [vmem:[#allocation7 + $0x10c] ss:$16 sps:$4 sm:$0xff]  }
  0xdb   : > { %1172 = vmatprep.subr.bf16.mxu1 %v2692_v60  ;;  %3113 = vst [vmem:[#allocation81_spill] sm:$0xff] %v2710_v51  ;;  %v2716_v60 = vld [vmem:[#allocation7 + $0x30c] ss:$16 sps:$4 sm:$0xff]  }
  0xdc   : > { %3114 = vst [vmem:[#allocation82_spill] sm:$0xff] %v2716_v60 }
  0xdd   : > { %1132 = vmatpush2.bf16.msra.mxu0 %v2696_v59  ;;  %v2722_v59 = vld [vmem:[#allocation7 + $0x308] ss:$16 sps:$4 sm:$0xff]  }
  0xde   : > { %1173 = vmatpush2.bf16.msra.mxu1 %v2698_v62  ;;  %1133 = vmatprep.subr.bf16.mxu0 %v2702_v63  ;;  %v2728_v63 = vld [vmem:[%s207_s27] sm:$0xff] }
  0xdf   : > { %1174 = vmatprep.subr.bf16.mxu1 %v2704_v56  ;;  %v2732_v56 = vld [vmem:[%s207_s27 + $0x8] sm:$0xff] }
  0xe1   : > { %1134 = vmatpush2.bf16.msra.mxu0 %v2708_v47 }
  0xe2   : > { %1175 = vmatpush2.bf16.msra.mxu1 %v2710_v51  ;;  %1135 = vmatprep.subr.bf16.mxu0 %v2714_v48  ;;  %v2740_v51 = vcombine.high %v2728_v63, %v2728_v63 }
  0xe3   : > { %1176 = vmatprep.subr.bf16.mxu1 %v2716_v60  ;;  %v2744_v60 = vcombine.high %v2732_v56, %v2732_v56 }
  0xe5   : > { %1136 = vmatpush2.bf16.msra.mxu0 %v2720_v55 }
  0xe6   : > { %1177 = vmatpush2.bf16.msra.mxu1 %v2722_v59  ;;  %1203 = vmatprep.subr.bf16.mxu0 %v2330_v0  ;;  %v3115_v0 = vld [vmem:[#allocation13_spill] sm:$0xff] }
  0xe7   : > { %1244 = vmatprep.subr.bf16.mxu1 %v2332_v1  ;;  %v3116_v1 = vld [vmem:[#allocation14_spill] sm:$0xff] }
  0xe8   : > { %1138 = vmatmul.mubr.bf16.vlgmr.msra.gmra.mxu0 %v2531_v61  ;;  %v3168_v61 = vld [vmem:[#allocation66_spill] sm:$0xff] }
  0xe9   : > { %1179 = vmatmul.mubr.bf16.vlgmr.msra.gmra.mxu1 %v2533_v54  ;;  %1204 = vmatpush1.bf16.msra.mxu0 %v2335_v2  ;;  %v3117_v2 = vld [vmem:[#allocation15_spill] sm:$0xff]  ;;  %v3163_v54 = vld [vmem:[#allocation61_spill] sm:$0xff] }
  0xea   : > { %1245 = vmatpush1.bf16.msra.mxu1 %v2337_v3  ;;  %1205 = vmatprep.subr.bf16.mxu0 %v2340_v4  ;;  %v3118_v3 = vld [vmem:[#allocation16_spill] sm:$0xff]  ;;  %v3119_v4 = vld [vmem:[#allocation17_spill] sm:$0xff] }
  0xeb   : > { %1246 = vmatprep.subr.bf16.mxu1 %v2344_v5  ;;  %1235 = vmatprep.mubr.bf16.mxu0 %v2740_v51  ;;  %v3120_v5 = vld [vmem:[#allocation18_spill] sm:$0xff] }
  0xec   : > { %1276 = vmatprep.mubr.bf16.mxu1 %v2744_v60 }
  0xed   : > { %1206 = vmatpush1.bf16.msra.mxu0 %v2346_v6  ;;  %v3121_v6 = vld [vmem:[#allocation19_spill] sm:$0xff] }
  0xee   : > { %1247 = vmatpush1.bf16.msra.mxu1 %v2349_v7  ;;  %1207 = vmatprep.subr.bf16.mxu0 %v2352_v8  ;;  %v3122_v7 = vld [vmem:[#allocation20_spill] sm:$0xff]  ;;  %v3123_v8 = vld [vmem:[#allocation21_spill] sm:$0xff] }
  0xef   : > { %1248 = vmatprep.subr.bf16.mxu1 %v2354_v9  ;;  %v3124_v9 = vld [vmem:[#allocation22_spill] sm:$0xff] }
  0xf1   : > { %1208 = vmatpush1.bf16.msra.mxu0 %v2356_v10  ;;  %v3125_v10 = vld [vmem:[#allocation23_spill] sm:$0xff] }
  0xf2   : > { %1249 = vmatpush1.bf16.msra.mxu1 %v2358_v11  ;;  %1209 = vmatprep.subr.bf16.mxu0 %v2362_v12  ;;  %v3126_v11 = vld [vmem:[#allocation24_spill] sm:$0xff]  ;;  %v2812_v12 = vcombine.low %v2728_v63, %v2728_v63  ;;  %v3169_v63 = vld [vmem:[#allocation67_spill] sm:$0xff] }
  0xf3   : > { %1250 = vmatprep.subr.bf16.mxu1 %v2366_v13  ;;  %v2816_v13 = vcombine.low %v2732_v56, %v2732_v56  ;;  %v3164_v56 = vld [vmem:[#allocation62_spill] sm:$0xff] }
  0xf5   : > { %1210 = vmatpush1.bf16.msra.mxu0 %v2368_v14  ;;  %v3127_v14 = vld [vmem:[#allocation25_spill] sm:$0xff] }
  0xf6   : > { %1251 = vmatpush1.bf16.msra.mxu1 %v2372_v15  ;;  %1211 = vmatprep.subr.bf16.mxu0 %v2374_v16  ;;  %v3128_v15 = vld [vmem:[#allocation26_spill] sm:$0xff]  ;;  %v3129_v16 = vld [vmem:[#allocation27_spill] sm:$0xff] }
  0xf7   : > { %1252 = vmatprep.subr.bf16.mxu1 %v2378_v17  ;;  %v3130_v17 = vld [vmem:[#allocation28_spill] sm:$0xff] }
  0xf9   : > { %1212 = vmatpush1.bf16.msra.mxu0 %v2380_v18  ;;  %v3131_v18 = vld [vmem:[#allocation29_spill] sm:$0xff] }
  0xfa   : > { %1253 = vmatpush1.bf16.msra.mxu1 %v2382_v19  ;;  %1213 = vmatprep.subr.bf16.mxu0 %v2386_v20  ;;  %v3132_v19 = vld [vmem:[#allocation30_spill] sm:$0xff]  ;;  %v3133_v20 = vld [vmem:[#allocation31_spill] sm:$0xff] }
  0xfb   : > { %1254 = vmatprep.subr.bf16.mxu1 %v2390_v21  ;;  %v3134_v21 = vld [vmem:[#allocation32_spill] sm:$0xff] }
  0xfd   : > { %1214 = vmatpush1.bf16.msra.mxu0 %v2392_v22  ;;  %v3135_v22 = vld [vmem:[#allocation33_spill] sm:$0xff] }
  0xfe   : > { %1255 = vmatpush1.bf16.msra.mxu1 %v2396_v23  ;;  %1215 = vmatprep.subr.bf16.mxu0 %v2398_v24  ;;  %v3136_v23 = vld [vmem:[#allocation34_spill] sm:$0xff]  ;;  %v3137_v24 = vld [vmem:[#allocation35_spill] sm:$0xff] }
  0xff   : > { %1256 = vmatprep.subr.bf16.mxu1 %v2402_v25  ;;  %v3138_v25 = vld [vmem:[#allocation36_spill] sm:$0xff] }
 0x101   : > { %1216 = vmatpush1.bf16.msra.mxu0 %v2404_v26  ;;  %v3139_v26 = vld [vmem:[#allocation37_spill] sm:$0xff] }
 0x102   : > { %1257 = vmatpush1.bf16.msra.mxu1 %v2406_v27  ;;  %1217 = vmatprep.subr.bf16.mxu0 %v2410_v28  ;;  %v3140_v27 = vld [vmem:[#allocation38_spill] sm:$0xff]  ;;  %v3141_v28 = vld [vmem:[#allocation39_spill] sm:$0xff] }
 0x103   : > { %1258 = vmatprep.subr.bf16.mxu1 %v2414_v29  ;;  %v3142_v29 = vld [vmem:[#allocation40_spill] sm:$0xff] }
 0x105   : > { %1218 = vmatpush1.bf16.msra.mxu0 %v2416_v30  ;;  %v3143_v30 = vld [vmem:[#allocation41_spill] sm:$0xff] }
 0x106   : > { %1259 = vmatpush1.bf16.msra.mxu1 %v2420_v31  ;;  %1219 = vmatprep.subr.bf16.mxu0 %v2422_v32  ;;  %v3144_v31 = vld [vmem:[#allocation42_spill] sm:$0xff]  ;;  %v3145_v32 = vld [vmem:[#allocation43_spill] sm:$0xff] }
 0x107   : > { %1260 = vmatprep.subr.bf16.mxu1 %v2426_v33  ;;  %v3146_v33 = vld [vmem:[#allocation44_spill] sm:$0xff] }
 0x109   : > { %1220 = vmatpush2.bf16.msra.mxu0 %v2428_v34  ;;  %v3147_v34 = vld [vmem:[#allocation45_spill] sm:$0xff] }
 0x10a   : > { %1261 = vmatpush2.bf16.msra.mxu1 %v2430_v35  ;;  %1221 = vmatprep.subr.bf16.mxu0 %v2434_v36  ;;  %v3148_v35 = vld [vmem:[#allocation46_spill] sm:$0xff]  ;;  %v3149_v36 = vld [vmem:[#allocation47_spill] sm:$0xff] }
 0x10b   : > { %1262 = vmatprep.subr.bf16.mxu1 %v2438_v37  ;;  %v3150_v37 = vld [vmem:[#allocation48_spill] sm:$0xff] }
 0x10d   : > { %1222 = vmatpush2.bf16.msra.mxu0 %v2440_v38  ;;  %v3151_v38 = vld [vmem:[#allocation49_spill] sm:$0xff] }
 0x10e   : > { %1263 = vmatpush2.bf16.msra.mxu1 %v2444_v39  ;;  %1223 = vmatprep.subr.bf16.mxu0 %v2446_v40  ;;  %v3152_v39 = vld [vmem:[#allocation50_spill] sm:$0xff]  ;;  %v3153_v40 = vld [vmem:[#allocation51_spill] sm:$0xff] }
 0x10f   : > { %1264 = vmatprep.subr.bf16.mxu1 %v2450_v41  ;;  %v3154_v41 = vld [vmem:[#allocation52_spill] sm:$0xff] }
 0x111   : > { %1224 = vmatpush2.bf16.msra.mxu0 %v2452_v42  ;;  %v3155_v42 = vld [vmem:[#allocation53_spill] sm:$0xff] }
 0x112   : > { %1265 = vmatpush2.bf16.msra.mxu1 %v2454_v43  ;;  %1225 = vmatprep.subr.bf16.mxu0 %v2458_v44  ;;  %v3156_v43 = vld [vmem:[#allocation54_spill] sm:$0xff]  ;;  %v3157_v44 = vld [vmem:[#allocation55_spill] sm:$0xff] }
 0x113   : > { %1266 = vmatprep.subr.bf16.mxu1 %v2462_v45  ;;  %v3158_v45 = vld [vmem:[#allocation56_spill] sm:$0xff] }
 0x115   : > { %1226 = vmatpush2.bf16.msra.mxu0 %v2472_v49  ;;  %v3159_v49 = vld [vmem:[#allocation57_spill] sm:$0xff] }
 0x116   : > { %1267 = vmatpush2.bf16.msra.mxu1 %v2474_v50  ;;  %1227 = vmatprep.subr.bf16.mxu0 %v2478_v52  ;;  %v3160_v50 = vld [vmem:[#allocation58_spill] sm:$0xff]  ;;  %v3161_v52 = vld [vmem:[#allocation59_spill] sm:$0xff] }
 0x117   : > { %1268 = vmatprep.subr.bf16.mxu1 %v2480_v53  ;;  %v3162_v53 = vld [vmem:[#allocation60_spill] sm:$0xff] }
 0x119   : > { %1228 = vmatpush2.bf16.msra.mxu0 %v3115_v0  ;;  %v3172_v0 = vld [vmem:[#allocation70_spill] sm:$0xff] }
 0x11a   : > { %1269 = vmatpush2.bf16.msra.mxu1 %v3116_v1  ;;  %1229 = vmatprep.subr.bf16.mxu0 %v3117_v2  ;;  %v3173_v1 = vld [vmem:[#allocation71_spill] sm:$0xff]  ;;  %v3174_v2 = vld [vmem:[#allocation72_spill] sm:$0xff] }
 0x11b   : > { %1270 = vmatprep.subr.bf16.mxu1 %v3118_v3  ;;  %v3175_v3 = vld [vmem:[#allocation73_spill] sm:$0xff] }
 0x11d   : > { %1230 = vmatpush2.bf16.msra.mxu0 %v3119_v4  ;;  %v3176_v4 = vld [vmem:[#allocation74_spill] sm:$0xff] }
 0x11e   : > { %1271 = vmatpush2.bf16.msra.mxu1 %v3120_v5  ;;  %1231 = vmatprep.subr.bf16.mxu0 %v3121_v6  ;;  %v3177_v5 = vld [vmem:[#allocation75_spill] sm:$0xff]  ;;  %v3178_v6 = vld [vmem:[#allocation76_spill] sm:$0xff] }
 0x11f   : > { %1272 = vmatprep.subr.bf16.mxu1 %v3122_v7  ;;  %v3179_v7 = vld [vmem:[#allocation77_spill] sm:$0xff] }
 0x121   : > { %1232 = vmatpush2.bf16.msra.mxu0 %v3123_v8  ;;  %v3180_v8 = vld [vmem:[#allocation78_spill] sm:$0xff] }
 0x122   : > { %1273 = vmatpush2.bf16.msra.mxu1 %v3124_v9  ;;  %1233 = vmatprep.subr.bf16.mxu0 %v3125_v10  ;;  %v3181_v9 = vld [vmem:[#allocation79_spill] sm:$0xff]  ;;  %v3182_v10 = vld [vmem:[#allocation80_spill] sm:$0xff] }
 0x123   : > { %1274 = vmatprep.subr.bf16.mxu1 %v3126_v11  ;;  %v3183_v11 = vld [vmem:[#allocation81_spill] sm:$0xff] }
 0x125   : > { %1234 = vmatpush2.bf16.msra.mxu0 %v2521_v57  ;;  %v3165_v57 = vld [vmem:[#allocation63_spill] sm:$0xff] }
 0x126   : > { %1275 = vmatpush2.bf16.msra.mxu1 %v2523_v58  ;;  %1285 = vmatprep.subr.bf16.mxu0 %v3127_v14  ;;  %v3166_v58 = vld [vmem:[#allocation64_spill] sm:$0xff]  ;;  %v3184_v14 = vld [vmem:[#allocation82_spill] sm:$0xff] }
 0x127   : > { %1326 = vmatprep.subr.bf16.mxu1 %v3128_v15 }
 0x128   : > { %1236 = vmatmul.mubr.bf16.vlgmr.msra.gmra.mxu0 %v2812_v12 }
 0x129   : > { %1277 = vmatmul.mubr.bf16.vlgmr.msra.gmra.mxu1 %v2816_v13  ;;  %1286 = vmatpush1.bf16.msra.mxu0 %v3129_v16 }
 0x12a   : > { %1327 = vmatpush1.bf16.msra.mxu1 %v3130_v17  ;;  %1287 = vmatprep.subr.bf16.mxu0 %v3131_v18 }
 0x12b   : > { %1328 = vmatprep.subr.bf16.mxu1 %v3132_v19  ;;  %1317 = vmatprep.mubr.bf16.mxu0 %v2740_v51  ;;  %v3171_v51 = vld [vmem:[#allocation69_spill] sm:$0xff] }
 0x12c   : > { %1358 = vmatprep.mubr.bf16.mxu1 %v2744_v60  ;;  %v3167_v60 = vld [vmem:[#allocation65_spill] sm:$0xff] }
 0x12d   : > { %1288 = vmatpush1.bf16.msra.mxu0 %v2551_v46  ;;  %v3170_v46 = vld [vmem:[#allocation68_spill] sm:$0xff] }
 0x12e   : > { %1329 = vmatpush1.bf16.msra.mxu1 %v3133_v20  ;;  %1289 = vmatprep.subr.bf16.mxu0 %v3134_v21 }
 0x12f   : > { %1330 = vmatprep.subr.bf16.mxu1 %v3135_v22  ;;  %v1367_v22 = vlaneseq }
 0x131   : > { %1290 = vmatpush1.bf16.msra.mxu0 %v3136_v23  ;;  %v1368_v23 = vand.u32 127, %v1367_v22 }
 0x132   : > { %1331 = vmatpush1.bf16.msra.mxu1 %v3137_v24  ;;  %1291 = vmatprep.subr.bf16.mxu0 %v3138_v25 }
 0x133   : > { %1332 = vmatprep.subr.bf16.mxu1 %v3139_v26  ;;  %vm1370_vm0 = vcmp.eq.s32.totalorder %v1368_v23, 0 }
 0x135   : > { %1292 = vmatpush1.bf16.msra.mxu0 %v3140_v27 }
 0x136   : > { %1333 = vmatpush1.bf16.msra.mxu1 %v3141_v28  ;;  %1293 = vmatprep.subr.bf16.mxu0 %v3142_v29 }
 0x137   : > { %1334 = vmatprep.subr.bf16.mxu1 %v3143_v30 }
 0x139   : > { %1294 = vmatpush1.bf16.msra.mxu0 %v3144_v31 }
 0x13a   : > { %1335 = vmatpush1.bf16.msra.mxu1 %v3145_v32  ;;  %1295 = vmatprep.subr.bf16.mxu0 %v3146_v33 }
 0x13b   : > { %1336 = vmatprep.subr.bf16.mxu1 %v3147_v34 }
 0x13d   : > { %1296 = vmatpush1.bf16.msra.mxu0 %v3148_v35 }
 0x13e   : > { %1337 = vmatpush1.bf16.msra.mxu1 %v3149_v36  ;;  %1297 = vmatprep.subr.bf16.mxu0 %v3150_v37 }
 0x13f   : > { %1338 = vmatprep.subr.bf16.mxu1 %v3151_v38 }
 0x141   : > { %1298 = vmatpush1.bf16.msra.mxu0 %v3152_v39 }
 0x142   : > { %1339 = vmatpush1.bf16.msra.mxu1 %v3153_v40  ;;  %1299 = vmatprep.subr.bf16.mxu0 %v3154_v41 }
 0x143   : > { %1340 = vmatprep.subr.bf16.mxu1 %v3155_v42 }
 0x145   : > { %1300 = vmatpush1.bf16.msra.mxu0 %v3156_v43 }
 0x146   : > { %1341 = vmatpush1.bf16.msra.mxu1 %v3157_v44  ;;  %1301 = vmatprep.subr.bf16.mxu0 %v3158_v45 }
 0x147   : > { %1342 = vmatprep.subr.bf16.mxu1 %v3159_v49 }
 0x149   : > { %1302 = vmatpush2.bf16.msra.mxu0 %v3160_v50 }
 0x14a   : > { %1343 = vmatpush2.bf16.msra.mxu1 %v3161_v52  ;;  %1303 = vmatprep.subr.bf16.mxu0 %v3162_v53 }
 0x14b   : > { %1344 = vmatprep.subr.bf16.mxu1 %v3163_v54 }
 0x14d   : > { %1304 = vmatpush2.bf16.msra.mxu0 %v3164_v56 }
 0x14e   : > { %1345 = vmatpush2.bf16.msra.mxu1 %v3165_v57  ;;  %1305 = vmatprep.subr.bf16.mxu0 %v3166_v58 }
 0x14f   : > { %1346 = vmatprep.subr.bf16.mxu1 %v3167_v60 }
 0x151   : > { %1306 = vmatpush2.bf16.msra.mxu0 %v3168_v61 }
 0x152   : > { %1347 = vmatpush2.bf16.msra.mxu1 %v3169_v63  ;;  %1307 = vmatprep.subr.bf16.mxu0 %v3170_v46 }
 0x153   : > { %1348 = vmatprep.subr.bf16.mxu1 %v3171_v51 }
 0x155   : > { %1308 = vmatpush2.bf16.msra.mxu0 %v3172_v0 }
 0x156   : > { %1349 = vmatpush2.bf16.msra.mxu1 %v3173_v1  ;;  %1309 = vmatprep.subr.bf16.mxu0 %v3174_v2 }
 0x157   : > { %1350 = vmatprep.subr.bf16.mxu1 %v3175_v3 }
 0x159   : > { %1310 = vmatpush2.bf16.msra.mxu0 %v3176_v4 }
 0x15a   : > { %1351 = vmatpush2.bf16.msra.mxu1 %v3177_v5  ;;  %1311 = vmatprep.subr.bf16.mxu0 %v3178_v6 }
 0x15b   : > { %1352 = vmatprep.subr.bf16.mxu1 %v3179_v7 }
 0x15d   : > { %1312 = vmatpush2.bf16.msra.mxu0 %v3180_v8 }
 0x15e   : > { %1353 = vmatpush2.bf16.msra.mxu1 %v2698_v62  ;;  %1313 = vmatprep.subr.bf16.mxu0 %v3181_v9 }
 0x15f   : > { %1354 = vmatprep.subr.bf16.mxu1 %v3182_v10 }
 0x161   : > { %1314 = vmatpush2.bf16.msra.mxu0 %v2708_v47 }
 0x162   : > { %1355 = vmatpush2.bf16.msra.mxu1 %v3183_v11  ;;  %1315 = vmatprep.subr.bf16.mxu0 %v2714_v48 }
 0x163   : > { %1356 = vmatprep.subr.bf16.mxu1 %v3184_v14 }
 0x165   : > { %1316 = vmatpush2.bf16.msra.mxu0 %v2720_v55 }
 0x166   : > { %1357 = vmatpush2.bf16.msra.mxu1 %v2722_v59 }
 0x168   : > { %v1057_v15 = vpop.f32.mrf.mxu0  ;;  %1318 = vmatmul.mubr.bf16.vlgmr.msra.gmra.mxu0 %v2812_v12 }
 0x169   : > { %v1098_v16 = vpop.f32.mrf.mxu1  ;;  %1359 = vmatmul.mubr.bf16.vlgmr.msra.gmra.mxu1 %v2816_v13 }
 0x16a   : > { %v1099_v62 = vadd.f32 %v1098_v16, %v1057_v15  ;;  %v1059_v17 = vpop.f32.mrf.mxu0 }
 0x16b   : > { %v1100_v18 = vpop.f32.mrf.mxu1 }
 0x16c   : > { %v1101_v47 = vadd.f32 %v1100_v18, %v1059_v17  ;;  %v1061_v19 = vpop.f32.mrf.mxu0  ;;  %v1374_v13 = vmul.f32 %v1099_v62, %v1099_v62 }
 0x16d   : > { %v1102_v20 = vpop.f32.mrf.mxu1 }
 0x16e   : > { %v1062_v21 = vpop.f32.mrf.mxu0  ;;  %v1375_v31 = vmul.f32 %v1101_v47, %v1101_v47 }
 0x16f   : > { %v1103_v48 = vpop.f32.mrf.mxu1 }
 0x1a8   : > { %v1139_v24 = vpop.f32.mrf.mxu0 }
 0x1a9   : > { %v1180_v55 = vpop.f32.mrf.mxu1 }
 0x1aa   : > { %v1181_v59 = vadd.f32 %v1180_v55, %v1139_v24  ;;  %v1141_v25 = vpop.f32.mrf.mxu0 }
 0x1ab   : > { %v1182_v26 = vpop.f32.mrf.mxu1 }
 0x1ac   : > { %v1372_v12 = vsel %vm1370_vm0, 0.0, %v1181_v59  ;;  %v1183_v27 = vadd.f32 %v1182_v26, %v1141_v25  ;;  %v1143_v29 = vpop.f32.mrf.mxu0  ;;  %v1394_v7 = vand.u32 2147483647, %v1181_v59 }
 0x1ad   : > { %v1376_v28 = vmul.f32 %v1372_v12, %v1372_v12  ;;  %v1184_v30 = vpop.f32.mrf.mxu1 }
 0x1ae   : > { %v1377_v32 = vmul.f32 %v1183_v27, %v1183_v27  ;;  %v1144_v34 = vpop.f32.mrf.mxu0  ;;  %v1396_v11 = vsel %vm1370_vm0, %v1394_v7, 0.0 }
 0x1af   : > { %v2891_v33 = vadd.f32 %v1376_v28, %v1374_v13  ;;  %v1185_v35 = vpop.f32.mrf.mxu1 }
 0x1b0   : > { %v2893_v36 = vadd.f32 %v1377_v32, %v1375_v31 }
 0x1b1   : > { %1978 = vrsqrt.f32 %v2891_v33  ;;  %vm1382_vm1 = vcmp.eq.f32.partialorder %v2891_v33, inf  ;;  %vm1384_vm2 = vcmp.eq.f32.partialorder %v2891_v33, 0.0  ;;  %v1385_v16 = vand.u32 2147483648, %v2891_v33 }
 0x1b2   : > { %1980 = vrsqrt.f32 %v2893_v36  ;;  %vm1389_vm3 = vcmp.eq.f32.partialorder %v2893_v36, inf  ;;  %vm1391_vm4 = vcmp.eq.f32.partialorder %v2893_v36, 0.0  ;;  %v1392_v19 = vand.u32 2147483648, %v2893_v36 }
 0x1be   : > { %v1979_v5 = vpop.eup %1978 }
 0x1bf   : > { %v1981_v6 = vpop.eup %1980  ;;  %v1381_v10 = vmul.f32 %v1979_v5, %v2891_v33 }
 0x1c0   : > { %v1388_v9 = vmul.f32 %v1981_v6, %v2893_v36 }
 0x1c1   : > { %v1383_v17 = vsel %vm1382_vm1, %v2891_v33, %v1381_v10 }
 0x1c2   : > { %v1390_v47 = vsel %vm1389_vm3, %v2893_v36, %v1388_v9  ;;  %v1386_v24 = vsel %vm1384_vm2, %v1385_v16, %v1383_v17 }
 0x1c3   : > { %v1393_v26 = vsel %vm1391_vm4, %v1392_v19, %v1390_v47 }
 0x1e8   : > { %v1237_v37 = vpop.f32.mrf.mxu0 }
 0x1e9   : > { %v1278_v38 = vpop.f32.mrf.mxu1 }
 0x1ea   : > { %v1279_v39 = vadd.f32 %v1278_v38, %v1237_v37  ;;  %v1239_v40 = vpop.f32.mrf.mxu0 }
 0x1eb   : > { %v1280_v41 = vpop.f32.mrf.mxu1 }
 0x1ec   : > { %v1281_v42 = vadd.f32 %v1280_v41, %v1239_v40  ;;  %v1241_v43 = vpop.f32.mrf.mxu0  ;;  %v1400_v60 = vmul.f32 %v1279_v39, %v1279_v39 }
 0x1ed   : > { %v1282_v44 = vpop.f32.mrf.mxu1 }
 0x1ee   : > { %v1242_v45 = vpop.f32.mrf.mxu0  ;;  %v1401_v51 = vmul.f32 %v1281_v42, %v1281_v42 }
 0x1ef   : > { %v1283_v49 = vpop.f32.mrf.mxu1 }
 0x228   : > { %v1319_v50 = vpop.f32.mrf.mxu0 }
 0x229   : > { %v1360_v52 = vpop.f32.mrf.mxu1 }
 0x22a   : > { %v1361_v53 = vadd.f32 %v1360_v52, %v1319_v50  ;;  %v1321_v54 = vpop.f32.mrf.mxu0 }
 0x22b   : > { %v1362_v56 = vpop.f32.mrf.mxu1 }
 0x22c   : > { %v1398_v57 = vsel %vm1370_vm0, 0.0, %v1361_v53  ;;  %v1363_v58 = vadd.f32 %v1362_v56, %v1321_v54  ;;  %v1323_v63 = vpop.f32.mrf.mxu0  ;;  %v1420_v8 = vand.u32 2147483647, %v1361_v53 }
 0x22d   : > { %v1402_v61 = vmul.f32 %v1398_v57, %v1398_v57  ;;  %v1364_v46 = vpop.f32.mrf.mxu1 }
 0x22e   : > { %v1403_v0 = vmul.f32 %v1363_v58, %v1363_v58  ;;  %v1324_v2 = vpop.f32.mrf.mxu0  ;;  %v1422_v14 = vsel %vm1370_vm0, %v1420_v8, 0.0 }
 0x22f   : > { %v1404_v1 = vadd.f32 %v1402_v61, %v1400_v60  ;;  %v1365_v3 = vpop.f32.mrf.mxu1  ;;  %v1428_v21 = vsub.f32 %v1396_v11, %v1422_v14 }
 0x230   : > { %v1405_v4 = vadd.f32 %v1403_v0, %v1401_v51 }
 0x231   : > { %1982 = vrsqrt.f32 %v1404_v1  ;;  %vm1408_vm5 = vcmp.eq.f32.partialorder %v1404_v1, inf  ;;  %v1411_v20 = vand.u32 2147483648, %v1404_v1  ;;  %vm1410_vm6 = vcmp.eq.f32.partialorder %v1404_v1, 0.0 }
 0x232   : > { %1984 = vrsqrt.f32 %v1405_v4  ;;  %vm1415_vm7 = vcmp.eq.f32.partialorder %v1405_v4, inf  ;;  %v1418_v23 = vand.u32 2147483648, %v1405_v4  ;;  %vm1417_vm8 = vcmp.eq.f32.partialorder %v1405_v4, 0.0 }
 0x233   : > { %v1430_v28 = vmul.f32 %v1428_v21, %v1428_v21 }
 0x23e   : > { %v1983_v15 = vpop.eup %1982 }
 0x23f   : > { %v1985_v62 = vpop.eup %1984  ;;  %v1407_v18 = vmul.f32 %v1983_v15, %v1404_v1 }
 0x240   : > { %v1414_v48 = vmul.f32 %v1985_v62, %v1405_v4 }
 0x241   : > { %v1409_v22 = vsel %vm1408_vm5, %v1404_v1, %v1407_v18 }
 0x242   : > { %v1412_v55 = vsel %vm1410_vm6, %v1411_v20, %v1409_v22  ;;  %v1416_v59 = vsel %vm1415_vm7, %v1405_v4, %v1414_v48 }
 0x243   : > { %v1424_v25 = vsub.f32 %v1386_v24, %v1412_v55  ;;  %v1419_v12 = vsel %vm1417_vm8, %v1418_v23, %v1416_v59 }
 0x244   : > { %v1425_v27 = vsub.f32 %v1393_v26, %v1419_v12 }
 0x245   : > { %v1426_v13 = vmul.f32 %v1424_v25, %v1424_v25 }
 0x246   : > { %v1427_v29 = vmul.f32 %v1425_v27, %v1425_v27 }
 0x247   : > { %v1432_v30 = vadd.f32 %v1430_v28, %v1426_v13 }
 0x248   : > { %1437 = vst [vmem:[%s238_s4 + $0x8] sm:$0xff] %v1427_v29 }
 0x249   : > { %1436 = vst [vmem:[%s238_s4] sm:$0xff] %v1432_v30 }
 0x24a   : > { %2081 = shalt.err (!%p2078_p9)
}
 0x24b   : > { %s2082_s28 = scalar_lea.hbm %s2919_s25, 256  ;;  %s2086_s11 = scalar_lea.hbm %s2959_s3, 512 }
 0x24c   : > { %p2083_p1 = scmp.ne.s32.totalorder %s2919_s25, %s2082_s28  ;;  %p2087_p7 = scmp.lt.s32.totalorder %s2919_s25, %s2959_s3 }
 0x24d   : > { %p2088_p11 = scmp.lt.s32.totalorder %s2086_s11, %s2082_s28 }
 0x24e   : > { %p2084_p4 = pnand %p2083_p1, %p3185_p12 }
 0x24f   : > { %p2089_p8 = por %p2088_p11, %p2087_p7 }
 0x250   : > { %p2085_p6 = pneg %p2084_p4 }
 0x252   : > { %p2090_p3 = pnand %p2089_p8, %p2085_p6 }
 0x254   : > { %2093 = shalt.err (!%p2090_p3)
}
 0x255   : > { %1722 = dma.vmem_to_hbm [thread:$0]  (%p3185_p12), %s1454_s10, 256, %s2919_s25, %s1439_s26  }
 0x256 PF: > { %s1465_s23 = sand.u32 1, %s2128_s12   ;;  %p3186_p10 = scmp.ne.s32.totalorder %s3035_s19, 0 }
 0x257   : > { %p3187_p2 = scmp.ge.s32.totalorder %s2140_s15, 2  ;;  %s1466_s27 = scalar_lea.sflag [#allocation4], %s1465_s23 }
 0x259   : > { %p1736_p13 = pnand %p3187_p2, %p3186_p10 }
 0x25b   : > { %p1737_p0 = pneg %p1736_p13 }
 0x25d   : > { %2123 = dma.done.wait (%p1737_p0), %s1466_s27, 256  }
 0x25e   : > { %2125 = vsyncadd (%p1737_p0), %s1466_s27, 4294967040  ;;  %p19_p5 = scmp.ge.s32.totalorder %s2222_s24, 4   ;;  %s3188_s12 = smov %s2132_s13 }
 0x25f   : > { %s3189_s13 = smov %s2136_s14  ;;  %s3190_s14 = smov %s2239_s5 }
 0x260   : > { %s3191_s15 = smov %s2222_s24  ;;  %21 = sbr.rel (!%p19_p5) target bundleno = 7 (0x7), region = 94 }
 0x265   :  { %1471 = vsyncpa [#allocation3], 1 }
 0x266   :  { %1473 = vsyncpa [#allocation3 + $0x1], 1 }
 0x267   :  { %1474 = vsyncpa [#allocation6], 1 }
 0x268   :  { %1476 = vsyncpa [#allocation6 + $0x1], 1 }
 0x269   :  { %1477 = vsyncpa [#allocation4], 1 }
 0x26a   :  { %1479 = vsyncpa [#allocation4 + $0x1], 1 }

</bundles_post_ra>
